<compile_context>
chip_gen: v6e
topology: v6e:2x2x1
jax: 0.10.0
libtpu: 0.0.40
codegen_flags: <defaults>
</compile_context>

<pallas_src>
import numpy as np
import jax
import jax.numpy as jnp
from jax.experimental import pallas as pl
from jax.experimental.pallas import tpu as pltpu

_LANES = 128


def _cdiv(a, b):
    return -(-a // b)


def _round_up(a, b):
    return _cdiv(a, b) * b


def _sublane_granule(dtype):
    # second-minor tiling granule: 8 for 4-byte, 16 for 2-byte, 32 for 1-byte
    return 8 * (4 // jnp.dtype(dtype).itemsize)


def _default_want_chunks(batch):
    """Spatial chunking only helps when a second TensorCore needs work (v7x)."""
    try:
        kind = jax.devices()[0].device_kind.lower()
    except Exception:  # defensive: never fail planning on a device query
        kind = ""
    if "v7" in kind and batch % 2 == 1:
        return 2
    return 1


def _plan_tiling(R, C, logits_dtype, target_dtype, want_chunks, block_bytes):
    """Returns (tile_rows, n_chunks, steps) for the (R, 128) spatial layout."""
    gran = max(_sublane_granule(logits_dtype), _sublane_granule(target_dtype))
    itemsize = jnp.dtype(logits_dtype).itemsize
    max_rows = max(gran, (block_bytes // (_LANES * C * itemsize)) // gran * gran)

    if want_chunks <= 1 or R < want_chunks * gran:
        if R <= max_rows:
            # One block covering all rows: block dim == array dim, so no
            # granule constraint and no ragged tail to mask.
            return R, 1, 1
        # Prefer a tile height that divides R exactly (no ragged tail).
        tile_rows = max_rows
        t = max_rows
        while t >= gran and 4 * t >= max_rows:
            if R % t == 0:
                tile_rows = t
                break
            t -= gran
        return tile_rows, 1, _cdiv(R, tile_rows)

    n_chunks = want_chunks
    tile_rows = min(max_rows, _round_up(_cdiv(R, n_chunks), gran))
    total_blocks = _cdiv(R, tile_rows)
    steps = _cdiv(total_blocks, n_chunks)
    return tile_rows, n_chunks, steps


def _make_dice_sums_kernel(nclass, steps, tile_rows, valid_rows,
                           need_row_mask, need_sentinel, approx_recip):
    C = nclass
    need_any_mask = need_row_mask or need_sentinel

    def kernel(logits_ref, target_ref, inter_ref, union_ref):
        # logits_ref: (1, C, TR, 128)   native dtype (f32 or bf16)
        # target_ref: (1, 1, TR, 128)   integer labels (sentinel == C for pads)
        # inter_ref / union_ref: (1, C, 128) f32 resident accumulator blocks
        step = pl.program_id(2)

        @pl.when(step == 0)
        def _init():
            inter_ref[...] = jnp.zeros_like(inter_ref)
            union_ref[...] = jnp.zeros_like(union_ref)

        t = target_ref[0, 0].astype(jnp.int32)                        # (TR,128)
        # Load + f32-cast each channel exactly once.
        xs = [logits_ref[0, c].astype(jnp.float32) for c in range(C)]

        if need_row_mask:
            # Ragged trailing row-block: rows >= valid_rows contain unspecified
            # data; sanitize them so they contribute nothing (and cannot NaN).
            row_block = pl.program_id(1) * steps + step
            row0 = row_block * tile_rows
            row_ids = row0 + jax.lax.broadcasted_iota(
                jnp.int32, (tile_rows, _LANES), 0)
            valid = row_ids < valid_rows
            xs = [jnp.where(valid, x, jnp.float32(0.0)) for x in xs]
            t = jnp.where(valid, t, C)

        # Channel softmax: spatial sits on (sublane, lane) so max / sum over
        # channels are plain element-wise ops on full vregs.
        m = xs[0]
        for c in range(1, C):
            m = jnp.maximum(m, xs[c])
        es = [jnp.exp(x - m) for x in xs]
        denom = es[0]
        for c in range(1, C):
            denom = denom + es[c]
        inv = pl.reciprocal(denom, approx=approx_recip)                # EUP slot
        if need_any_mask:
            # sentinel / invalid pixels: drop their softmax mass entirely
            inv = jnp.where(t < C, inv, jnp.float32(0.0))

        inter_rows = []
        union_rows = []
        for c in range(C):
            p_c = es[c] * inv                                          # (TR,128)
            hit = t == c                                               # one-hot on the fly
            hf = hit.astype(jnp.float32)
            inter_rows.append(
                jnp.sum(jnp.where(hit, p_c, jnp.float32(0.0)),
                        axis=0, keepdims=True))
            union_rows.append(jnp.sum(p_c + hf, axis=0, keepdims=True))

        # Single lane-dense (C, 128) accumulator update per step.
        inter_ref[0] = inter_ref[0] + jnp.concatenate(inter_rows, axis=0)
        union_ref[0] = union_ref[0] + jnp.concatenate(union_rows, axis=0)

    return kernel


class MaskDiceLossPallas:
    """Pallas/TPU equivalent of utils.losses.mask_DiceLoss (forward, mask=None)."""

    def __init__(self, nclass, class_weights=None, smooth=1e-5):
        self.smooth = smooth
        self.nclass = nclass
        if class_weights is None:
            # NOTE: class_weights are NOT used in forward(), same as in PyTorch.
            self.class_weights = jnp.ones((1, nclass), dtype=jnp.float32)
        else:
            class_weights = np.asarray(class_weights, dtype=np.float32)
            assert nclass == class_weights.shape[0]
            self.class_weights = jnp.asarray(class_weights, dtype=jnp.float32)

    def __call__(self, logits, target, mask=None, *, block_bytes=2 << 20,
                 want_chunks=None, approx_reciprocal=False):
        assert mask is None  # TODO(synk): mask branch not implemented
        N, C = logits.shape[0], logits.shape[1]
        assert C > 1  # TODO(synk): sigmoid (C == 1) branch not implemented
        S = int(np.prod(logits.shape[2:]))
        R = _cdiv(S, _LANES)

        # Labels: stream the smallest integer type that can hold the sentinel C.
        # (Callers should pass int8/uint8 labels to avoid any conversion pass.)
        if jnp.issubdtype(target.dtype, jnp.floating):
            target = target.astype(jnp.int32)
        if jnp.dtype(target.dtype).itemsize > 1 and C + 1 <= 127:
            target = target.astype(jnp.int8)

        if want_chunks is None:
            want_chunks = _default_want_chunks(N)

        tile_rows, n_chunks, steps = _plan_tiling(
            R, C, logits.dtype, target.dtype, want_chunks, block_bytes)

        S_pad = R * _LANES
        need_sentinel = S_pad != S          # only host-side copy in the pipeline
        logits_r = logits.reshape(N, C, S)
        target_r = target.reshape(N, 1, S)
        if need_sentinel:
            logits_r = jnp.pad(logits_r, ((0, 0), (0, 0), (0, S_pad - S)))
            target_r = jnp.pad(target_r, ((0, 0), (0, 0), (0, S_pad - S)),
                               constant_values=C)
        logits_r = logits_r.reshape(N, C, R, _LANES)
        target_r = target_r.reshape(N, 1, R, _LANES)

        coverage = n_chunks * steps * tile_rows
        need_row_mask = coverage != R
        total_row_blocks = _cdiv(R, tile_rows)
        clamp_blocks = n_chunks * steps > total_row_blocks  # fully-OOB blocks possible

        kernel = _make_dice_sums_kernel(C, steps, tile_rows, R,
                                        need_row_mask, need_sentinel,
                                        bool(approx_reciprocal))

        if clamp_blocks:
            def in_map(n, ch, s):
                rb = jnp.minimum(ch * steps + s, total_row_blocks - 1)
                return (n, 0, rb, 0)
        else:
            def in_map(n, ch, s):
                return (n, 0, ch * steps + s, 0)

        def out_map(n, ch, s):
            return (n * n_chunks + ch, 0, 0)

        # VMEM budget: double-buffered input blocks + f32 element-wise temps.
        lg_block = tile_rows * _LANES * C * jnp.dtype(logits.dtype).itemsize
        tg_block = tile_rows * _LANES * jnp.dtype(target_r.dtype).itemsize
        f32_tile = tile_rows * _LANES * 4
        vmem_need = 2 * (lg_block + tg_block) + (2 * C + 8) * f32_tile + (1 << 20)
        vmem_limit = int(max(vmem_need, 32 << 20))

        inter, union = pl.pallas_call(
            kernel,
            out_shape=(
                jax.ShapeDtypeStruct((N * n_chunks, C, _LANES), jnp.float32),
                jax.ShapeDtypeStruct((N * n_chunks, C, _LANES), jnp.float32),
            ),
            grid_spec=pltpu.PrefetchScalarGridSpec(
                num_scalar_prefetch=0,
                grid=(N, n_chunks, steps),
                in_specs=[
                    pl.BlockSpec((1, C, tile_rows, _LANES), in_map),
                    pl.BlockSpec((1, 1, tile_rows, _LANES), in_map),
                ],
                out_specs=(
                    pl.BlockSpec((1, C, _LANES), out_map),
                    pl.BlockSpec((1, C, _LANES), out_map),
                ),
            ),
            compiler_params=pltpu.CompilerParams(
                dimension_semantics=("parallel", "parallel", "arbitrary"),
                vmem_limit_bytes=vmem_limit),
        )(logits_r, target_r)

        # Tiny glue: cross-lane + cross-chunk reduction, dice, mean.
        inter = inter.reshape(N, n_chunks, C, _LANES).sum(axis=(1, 3))
        union = union.reshape(N, n_chunks, C, _LANES).sum(axis=(1, 3))
        dice = (2.0 * inter + self.smooth) / (union + self.smooth)
        return 1.0 - jnp.mean(dice)


def _reference_loss(logits, target, smooth=1e-5):
    """Pure-JAX reference mirroring the PyTorch forward (mask=None, C>1)."""
    N, C = logits.shape[0], logits.shape[1]
    S = int(np.prod(logits.shape[2:]))
    lg = logits.reshape(N, C, S).astype(jnp.float32)
    tg = target.reshape(N, 1, S).astype(jnp.int32)
    pred = jax.nn.softmax(lg, axis=1)
    onehot = (tg == jnp.arange(C, dtype=jnp.int32)[None, :, None]).astype(jnp.float32)
    inter = jnp.sum(pred * onehot, axis=2)
    union = jnp.sum(pred + onehot, axis=2)
    dice = (2.0 * inter + smooth) / (union + smooth)
    return 1.0 - jnp.mean(dice)


if __name__ == "__main__":
    key = jax.random.PRNGKey(0)
    k1, k2 = jax.random.split(key)

    N, C, H, W = 2, 4, 16, 16
    logits = jax.random.normal(k1, (N, C, H, W), dtype=jnp.float32)
    target = jax.random.randint(k2, (N, 1, H, W), 0, C, dtype=jnp.int32)

    loss_fn = MaskDiceLossPallas(nclass=C)

    # f32 logits, single-block path
    loss = jax.block_until_ready(loss_fn(logits, target))
    ref = jax.block_until_ready(_reference_loss(logits, target))
    assert np.allclose(np.asarray(loss), np.asarray(ref), rtol=1e-5, atol=1e-5), (
        float(loss), float(ref))

    # bf16 logits: native dtype streamed to the kernel, f32 math inside.
    logits_bf16 = logits.astype(jnp.bfloat16)
    loss_bf = jax.block_until_ready(loss_fn(logits_bf16, target))
    ref_bf = jax.block_until_ready(
        _reference_loss(logits_bf16.astype(jnp.float32), target))
    assert np.allclose(np.asarray(loss_bf), np.asarray(ref_bf),
                       rtol=1e-4, atol=1e-4), (float(loss_bf), float(ref_bf))

    # non-multiple-of-128 spatial size: exercises the sentinel-pad path.
    H2 = W2 = 15
    logits2 = jax.random.normal(k1, (N, C, H2, W2), dtype=jnp.float32)
    target2 = jax.random.randint(k2, (N, 1, H2, W2), 0, C, dtype=jnp.int32)
    loss2 = jax.block_until_ready(loss_fn(logits2, target2))
    ref2 = jax.block_until_ready(_reference_loss(logits2, target2))
    assert np.allclose(np.asarray(loss2), np.asarray(ref2), rtol=1e-5, atol=1e-5), (
        float(loss2), float(ref2))

    # multi-step path: tiny block budget forces several row tiles per image and
    # exercises the resident-output accumulator + int8 label streaming.
    H3 = W3 = 128
    logits3 = jax.random.normal(k1, (N, C, H3, W3), dtype=jnp.float32)
    target3 = jax.random.randint(k2, (N, 1, H3, W3), 0, C, dtype=jnp.int32)
    loss3 = jax.block_until_ready(
        loss_fn(logits3, target3, block_bytes=1, want_chunks=1))
    ref3 = jax.block_until_ready(_reference_loss(logits3, target3))
    assert np.allclose(np.asarray(loss3), np.asarray(ref3), rtol=1e-5, atol=1e-5), (
        float(loss3), float(ref3))

    print("KERNEL_OK")
</pallas_src>

<mosaic_0001>
module attributes {stable_mosaic.version = 11 : i64} {
  func.func @kernel(%arg0: i32, %arg1: i32, %arg2: i32, %arg3: memref<1x4x2x128xf32, #tpu.memory_space<vmem>>, %arg4: memref<1x1x2x128xi8, #tpu.memory_space<vmem>>, %arg5: memref<1x4x128xf32, #tpu.memory_space<vmem>>, %arg6: memref<1x4x128xf32, #tpu.memory_space<vmem>>) attributes {dimension_semantics = [#tpu.dimension_semantics<parallel>, #tpu.dimension_semantics<parallel>, #tpu.dimension_semantics<arbitrary>], iteration_bounds = array<i64: 2, 1, 1>, scalar_prefetch = 0 : i64, scratch_operands = 0 : i64, tpu.core_type = #tpu.core_type<tc>, window_params = [{transform_indices = @transform_0, window_bounds = array<i64: 1, 4, 2, 128>}, {transform_indices = @transform_1, window_bounds = array<i64: 1, 1, 2, 128>}, {transform_indices = @transform_2, window_bounds = array<i64: 1, 4, 128>}, {transform_indices = @transform_3, window_bounds = array<i64: 1, 4, 128>}]} {
    %c0_i32 = arith.constant 0 : i32
    %0 = arith.cmpi eq, %arg2, %c0_i32 : i32
    %1 = arith.extui %0 : i1 to i32
    %c0_i32_0 = arith.constant 0 : i32
    %2 = arith.cmpi ne, %1, %c0_i32_0 : i32
    scf.if %2 {
      %cst_41 = arith.constant 0.000000e+00 : f32
      %91 = vector.broadcast %cst_41 : f32 to vector<1x4x128xf32>
      %c0_42 = arith.constant 0 : index
      %c0_43 = arith.constant 0 : index
      %c0_44 = arith.constant 0 : index
      %92 = vector.load %arg5[%c0_42, %c0_43, %c0_44] : memref<1x4x128xf32, #tpu.memory_space<vmem>>, vector<1x4x128xf32>
      tpu.vector_store %arg5[%c0_42, %c0_43, %c0_44], %91 {strides = array<i32>} : memref<1x4x128xf32, #tpu.memory_space<vmem>>, vector<1x4x128xf32>,
      %cst_45 = arith.constant 0.000000e+00 : f32
      %93 = vector.broadcast %cst_45 : f32 to vector<1x4x128xf32>
      %c0_46 = arith.constant 0 : index
      %c0_47 = arith.constant 0 : index
      %c0_48 = arith.constant 0 : index
      %94 = vector.load %arg6[%c0_46, %c0_47, %c0_48] : memref<1x4x128xf32, #tpu.memory_space<vmem>>, vector<1x4x128xf32>
      tpu.vector_store %arg6[%c0_46, %c0_47, %c0_48], %93 {strides = array<i32>} : memref<1x4x128xf32, #tpu.memory_space<vmem>>, vector<1x4x128xf32>,
    } else {
    }
    %c0 = arith.constant 0 : index
    %c0_1 = arith.constant 0 : index
    %c0_2 = arith.constant 0 : index
    %c0_3 = arith.constant 0 : index
    %3 = vector.load %arg4[%c0, %c0_1, %c0_2, %c0_3] : memref<1x1x2x128xi8, #tpu.memory_space<vmem>>, vector<1x1x2x128xi8>
    %4 = vector.shape_cast %3 : vector<1x1x2x128xi8> to vector<2x128xi8>
    %5 = arith.extsi %4 : vector<2x128xi8> to vector<2x128xi32>
    %c0_4 = arith.constant 0 : index
    %c0_5 = arith.constant 0 : index
    %c0_6 = arith.constant 0 : index
    %c0_7 = arith.constant 0 : index
    %6 = vector.load %arg3[%c0_4, %c0_5, %c0_6, %c0_7] : memref<1x4x2x128xf32, #tpu.memory_space<vmem>>, vector<1x1x2x128xf32>
    %7 = vector.shape_cast %6 : vector<1x1x2x128xf32> to vector<2x128xf32>
    %c0_8 = arith.constant 0 : index
    %c1 = arith.constant 1 : index
    %c0_9 = arith.constant 0 : index
    %c0_10 = arith.constant 0 : index
    %8 = vector.load %arg3[%c0_8, %c1, %c0_9, %c0_10] : memref<1x4x2x128xf32, #tpu.memory_space<vmem>>, vector<1x1x2x128xf32>
    %9 = vector.shape_cast %8 : vector<1x1x2x128xf32> to vector<2x128xf32>
    %c0_11 = arith.constant 0 : index
    %c2 = arith.constant 2 : index
    %c0_12 = arith.constant 0 : index
    %c0_13 = arith.constant 0 : index
    %10 = vector.load %arg3[%c0_11, %c2, %c0_12, %c0_13] : memref<1x4x2x128xf32, #tpu.memory_space<vmem>>, vector<1x1x2x128xf32>
    %11 = vector.shape_cast %10 : vector<1x1x2x128xf32> to vector<2x128xf32>
    %c0_14 = arith.constant 0 : index
    %c3 = arith.constant 3 : index
    %c0_15 = arith.constant 0 : index
    %c0_16 = arith.constant 0 : index
    %12 = vector.load %arg3[%c0_14, %c3, %c0_15, %c0_16] : memref<1x4x2x128xf32, #tpu.memory_space<vmem>>, vector<1x1x2x128xf32>
    %13 = vector.shape_cast %12 : vector<1x1x2x128xf32> to vector<2x128xf32>
    %14 = arith.maximumf %7, %9 : vector<2x128xf32>
    %15 = arith.maximumf %14, %11 : vector<2x128xf32>
    %16 = arith.maximumf %15, %13 : vector<2x128xf32>
    %17 = arith.subf %7, %16 : vector<2x128xf32>
    %18 = math.exp %17 : vector<2x128xf32>
    %19 = arith.subf %9, %16 : vector<2x128xf32>
    %20 = math.exp %19 : vector<2x128xf32>
    %21 = arith.subf %11, %16 : vector<2x128xf32>
    %22 = math.exp %21 : vector<2x128xf32>
    %23 = arith.subf %13, %16 : vector<2x128xf32>
    %24 = math.exp %23 : vector<2x128xf32>
    %25 = arith.addf %18, %20 : vector<2x128xf32>
    %26 = arith.addf %25, %22 : vector<2x128xf32>
    %27 = arith.addf %26, %24 : vector<2x128xf32>
    %28 = tpu.reciprocal %27 : vector<2x128xf32> -> vector<2x128xf32>
    %29 = arith.mulf %18, %28 : vector<2x128xf32>
    %c0_i32_17 = arith.constant 0 : i32
    %30 = vector.broadcast %c0_i32_17 : i32 to vector<2x128xi32>
    %31 = arith.cmpi eq, %5, %30 : vector<2x128xi32>
    %32 = arith.extui %31 : vector<2x128xi1> to vector<2x128xi32>
    %33 = arith.sitofp %32 : vector<2x128xi32> to vector<2x128xf32>
    %cst = arith.constant 0.000000e+00 : f32
    %34 = vector.broadcast %cst : f32 to vector<2x128xf32>
    %35 = arith.select %31, %29, %34 : vector<2x128xi1>, vector<2x128xf32>
    %cst_18 = arith.constant dense<0.000000e+00> : vector<128xf32>
    %36 = vector.multi_reduction <add>, %35, %cst_18 [0] : vector<2x128xf32> to vector<128xf32>
    %37 = vector.shape_cast %36 : vector<128xf32> to vector<1x128xf32>
    %38 = arith.addf %29, %33 : vector<2x128xf32>
    %cst_19 = arith.constant dense<0.000000e+00> : vector<128xf32>
    %39 = vector.multi_reduction <add>, %38, %cst_19 [0] : vector<2x128xf32> to vector<128xf32>
    %40 = vector.shape_cast %39 : vector<128xf32> to vector<1x128xf32>
    %41 = arith.mulf %20, %28 : vector<2x128xf32>
    %c1_i32 = arith.constant 1 : i32
    %42 = vector.broadcast %c1_i32 : i32 to vector<2x128xi32>
    %43 = arith.cmpi eq, %5, %42 : vector<2x128xi32>
    %44 = arith.extui %43 : vector<2x128xi1> to vector<2x128xi32>
    %45 = arith.sitofp %44 : vector<2x128xi32> to vector<2x128xf32>
    %cst_20 = arith.constant 0.000000e+00 : f32
    %46 = vector.broadcast %cst_20 : f32 to vector<2x128xf32>
    %47 = arith.select %43, %41, %46 : vector<2x128xi1>, vector<2x128xf32>
    %cst_21 = arith.constant dense<0.000000e+00> : vector<128xf32>
    %48 = vector.multi_reduction <add>, %47, %cst_21 [0] : vector<2x128xf32> to vector<128xf32>
    %49 = vector.shape_cast %48 : vector<128xf32> to vector<1x128xf32>
    %50 = arith.addf %41, %45 : vector<2x128xf32>
    %cst_22 = arith.constant dense<0.000000e+00> : vector<128xf32>
    %51 = vector.multi_reduction <add>, %50, %cst_22 [0] : vector<2x128xf32> to vector<128xf32>
    %52 = vector.shape_cast %51 : vector<128xf32> to vector<1x128xf32>
    %53 = arith.mulf %22, %28 : vector<2x128xf32>
    %c2_i32 = arith.constant 2 : i32
    %54 = vector.broadcast %c2_i32 : i32 to vector<2x128xi32>
    %55 = arith.cmpi eq, %5, %54 : vector<2x128xi32>
    %56 = arith.extui %55 : vector<2x128xi1> to vector<2x128xi32>
    %57 = arith.sitofp %56 : vector<2x128xi32> to vector<2x128xf32>
    %cst_23 = arith.constant 0.000000e+00 : f32
    %58 = vector.broadcast %cst_23 : f32 to vector<2x128xf32>
    %59 = arith.select %55, %53, %58 : vector<2x128xi1>, vector<2x128xf32>
    %cst_24 = arith.constant dense<0.000000e+00> : vector<128xf32>
    %60 = vector.multi_reduction <add>, %59, %cst_24 [0] : vector<2x128xf32> to vector<128xf32>
    %61 = vector.shape_cast %60 : vector<128xf32> to vector<1x128xf32>
    %62 = arith.addf %53, %57 : vector<2x128xf32>
    %cst_25 = arith.constant dense<0.000000e+00> : vector<128xf32>
    %63 = vector.multi_reduction <add>, %62, %cst_25 [0] : vector<2x128xf32> to vector<128xf32>
    %64 = vector.shape_cast %63 : vector<128xf32> to vector<1x128xf32>
    %65 = arith.mulf %24, %28 : vector<2x128xf32>
    %c3_i32 = arith.constant 3 : i32
    %66 = vector.broadcast %c3_i32 : i32 to vector<2x128xi32>
    %67 = arith.cmpi eq, %5, %66 : vector<2x128xi32>
    %68 = arith.extui %67 : vector<2x128xi1> to vector<2x128xi32>
    %69 = arith.sitofp %68 : vector<2x128xi32> to vector<2x128xf32>
    %cst_26 = arith.constant 0.000000e+00 : f32
    %70 = vector.broadcast %cst_26 : f32 to vector<2x128xf32>
    %71 = arith.select %67, %65, %70 : vector<2x128xi1>, vector<2x128xf32>
    %cst_27 = arith.constant dense<0.000000e+00> : vector<128xf32>
    %72 = vector.multi_reduction <add>, %71, %cst_27 [0] : vector<2x128xf32> to vector<128xf32>
    %73 = vector.shape_cast %72 : vector<128xf32> to vector<1x128xf32>
    %74 = arith.addf %65, %69 : vector<2x128xf32>
    %cst_28 = arith.constant dense<0.000000e+00> : vector<128xf32>
    %75 = vector.multi_reduction <add>, %74, %cst_28 [0] : vector<2x128xf32> to vector<128xf32>
    %76 = vector.shape_cast %75 : vector<128xf32> to vector<1x128xf32>
    %c0_29 = arith.constant 0 : index
    %c0_30 = arith.constant 0 : index
    %c0_31 = arith.constant 0 : index
    %77 = vector.load %arg5[%c0_29, %c0_30, %c0_31] : memref<1x4x128xf32, #tpu.memory_space<vmem>>, vector<1x4x128xf32>
    %78 = vector.shape_cast %77 : vector<1x4x128xf32> to vector<4x128xf32>
    %79 = tpu.concatenate %37, %49, %61, %73 in 0 : vector<1x128xf32>, vector<1x128xf32>, vector<1x128xf32>, vector<1x128xf32> -> vector<4x128xf32>
    %80 = arith.addf %78, %79 : vector<4x128xf32>
    %c0_32 = arith.constant 0 : index
    %c0_33 = arith.constant 0 : index
    %c0_34 = arith.constant 0 : index
    %81 = vector.load %arg5[%c0_32, %c0_33, %c0_34] : memref<1x4x128xf32, #tpu.memory_space<vmem>>, vector<1x4x128xf32>
    %82 = vector.shape_cast %81 : vector<1x4x128xf32> to vector<4x128xf32>
    %83 = vector.shape_cast %80 : vector<4x128xf32> to vector<1x4x128xf32>
    tpu.vector_store %arg5[%c0_32, %c0_33, %c0_34], %83 {strides = array<i32>} : memref<1x4x128xf32, #tpu.memory_space<vmem>>, vector<1x4x128xf32>,
    %c0_35 = arith.constant 0 : index
    %c0_36 = arith.constant 0 : index
    %c0_37 = arith.constant 0 : index
    %84 = vector.load %arg6[%c0_35, %c0_36, %c0_37] : memref<1x4x128xf32, #tpu.memory_space<vmem>>, vector<1x4x128xf32>
    %85 = vector.shape_cast %84 : vector<1x4x128xf32> to vector<4x128xf32>
    %86 = tpu.concatenate %40, %52, %64, %76 in 0 : vector<1x128xf32>, vector<1x128xf32>, vector<1x128xf32>, vector<1x128xf32> -> vector<4x128xf32>
    %87 = arith.addf %85, %86 : vector<4x128xf32>
    %c0_38 = arith.constant 0 : index
    %c0_39 = arith.constant 0 : index
    %c0_40 = arith.constant 0 : index
    %88 = vector.load %arg6[%c0_38, %c0_39, %c0_40] : memref<1x4x128xf32, #tpu.memory_space<vmem>>, vector<1x4x128xf32>
    %89 = vector.shape_cast %88 : vector<1x4x128xf32> to vector<4x128xf32>
    %90 = vector.shape_cast %87 : vector<4x128xf32> to vector<1x4x128xf32>
    tpu.vector_store %arg6[%c0_38, %c0_39, %c0_40], %90 {strides = array<i32>} : memref<1x4x128xf32, #tpu.memory_space<vmem>>, vector<1x4x128xf32>,
    return
  }
  func.func @transform_0(%arg0: i32, %arg1: i32, %arg2: i32) -> (i32, i32, i32, i32) {
    %c1_i32 = arith.constant 1 : i32
    %0 = arith.muli %arg1, %c1_i32 : i32
    %1 = arith.addi %0, %arg2 : i32
    %c0_i32 = arith.constant 0 : i32
    %c0_i32_0 = arith.constant 0 : i32
    %c0_i32_1 = arith.constant 0 : i32
    return %arg0, %c0_i32, %1, %c0_i32_0 : i32, i32, i32, i32
  }
  func.func @transform_1(%arg0: i32, %arg1: i32, %arg2: i32) -> (i32, i32, i32, i32) {
    %c1_i32 = arith.constant 1 : i32
    %0 = arith.muli %arg1, %c1_i32 : i32
    %1 = arith.addi %0, %arg2 : i32
    %c0_i32 = arith.constant 0 : i32
    %c0_i32_0 = arith.constant 0 : i32
    %c0_i32_1 = arith.constant 0 : i32
    return %arg0, %c0_i32, %1, %c0_i32_0 : i32, i32, i32, i32
  }
  func.func @transform_2(%arg0: i32, %arg1: i32, %arg2: i32) -> (i32, i32, i32) {
    %c1_i32 = arith.constant 1 : i32
    %0 = arith.muli %arg0, %c1_i32 : i32
    %1 = arith.addi %0, %arg1 : i32
    %c0_i32 = arith.constant 0 : i32
    %c0_i32_0 = arith.constant 0 : i32
    %c0_i32_1 = arith.constant 0 : i32
    return %1, %c0_i32, %c0_i32_0 : i32, i32, i32
  }
  func.func @transform_3(%arg0: i32, %arg1: i32, %arg2: i32) -> (i32, i32, i32) {
    %c1_i32 = arith.constant 1 : i32
    %0 = arith.muli %arg0, %c1_i32 : i32
    %1 = arith.addi %0, %arg1 : i32
    %c0_i32 = arith.constant 0 : i32
    %c0_i32_0 = arith.constant 0 : i32
    %c0_i32_1 = arith.constant 0 : i32
    return %1, %c0_i32, %c0_i32_0 : i32, i32, i32
  }
}

</mosaic_0001>

<bundles_post_ra>
// kernel: tpu_custom_call.1
= control target key start
LH: loop header
LB: loop body
LE: loop exit
PB: predicated region body
PF: predicated region fallthrough
CT: control target
= control target key end

     0   :  { %9 = vsyncpa [#allocation3], 0  ;;  %s1121_s0 = inlined_call_operand.hbm [shape: f32[2,4,2,128], index: 0, kind: input, shape index: {}]   ;;  %s1122_s1 = inlined_call_operand.hbm [shape: s8[2,1,2,128], index: 1, kind: input, shape index: {}]   ;;  %s1123_s2 = inlined_call_operand.hbm [shape: f32[2,4,128], index: 2, kind: output, shape index: {0}]   ;;  %s1124_s3 = inlined_call_operand.hbm [shape: f32[2,4,128], index: 3, kind: output, shape index: {1}]  }
   0x1   :  { %11 = vsyncpa [#allocation3 + $0x1], 0 }
   0x2   :  { %12 = vsyncpa [#allocation6], 0 }
   0x3   :  { %14 = vsyncpa [#allocation6 + $0x1], 0 }
   0x4   :  { %15 = vsyncpa [#allocation4], 0 }
   0x5   :  { %17 = vsyncpa [#allocation4 + $0x1], 0 }
   0x6   :  { %18 = vsyncpa [#allocation9], 0 }
   0x7   :  { %20 = vsyncpa [#allocation9 + $0x1], 0  ;;  %s886_s12 = smov 0   ;;  %s888_s13 = smov 0  }
   0x8   :  { %s890_s14 = smov 0   ;;  %s892_s15 = smov 0  }
   0x9   :  { %s894_s16 = smov 0   ;;  %s896_s17 = smov 0  }
   0xa LB: > { %s576_s18 = sadd.s32 4294967295, %s857_s17   ;;  %s577_s19 = sadd.s32 4294967294, %s857_s17   ;;  %s857_s17 = sphi %s896_s17, %s26_s17   ;;  %s853_s16 = sphi %s894_s16, %s1135_s16   ;;  %s849_s15 = sphi %s892_s15, %s1134_s15   ;;  %s845_s14 = sphi %s890_s14, %s1133_s14   ;;  %s841_s13 = sphi %s888_s13, %s1132_s13   ;;  %s837_s12 = sphi %s886_s12, %s1131_s12  }
   0xb   : > { %s45_s20 = sadd.s32 1, %s853_s16  ;;  %s56_s21 = sadd.s32 1, %s845_s14 }
   0xc   : > { %p47_p0 = scmp.ge.s32.totalorder %s45_s20, 2  ;;  %p63_p1 = scmp.ne.s32.totalorder %s845_s14, %s841_s13 }
   0xd   : > { %p64_p2 = scmp.eq.s32.totalorder %s857_s17, 0  ;;  %p69_p3 = scmp.ne.s32.totalorder %s841_s13, %s837_s12 }
   0xe   : > { %s1137_s20 = smov (%p47_p0, %s45_s20), 0  ;;  %p70_p5 = scmp.eq.s32.totalorder %s576_s18, 0 }
   0xf   : > { %p927_p4 = por %p64_p2, %p63_p1  ;;  %s51_s23 = ssub.s32 %s853_s16, %s1137_s20 }
  0x10   : > { %p125_p6 = scmp.eq.s32.totalorder %s576_s18, 1  ;;  %p54_p7 = scmp.eq.s32.totalorder %s51_s23, 0 }
  0x11   : > { %p933_p8 = por %p70_p5, %p69_p3  ;;  %p131_p10 = scmp.eq.s32.totalorder %s577_s19, 1 }
  0x12   : > { %p937_p9 = por %p125_p6, %p63_p1  ;;  %p579_p12 = scmp.ge.s32.totalorder %s857_s17, 2 }
  0x13   : > { %s942_s26 = scalar_select %p54_p7, %s845_s14, %s56_s21  }
  0x14   : > { %p944_p11 = por %p131_p10, %p69_p3  ;;  %p624_p13 = scmp.lt.s32.totalorder %s857_s17, 2 }
  0x15   : > { %s951_s28 = sand.u32 1, %s845_s14   ;;  %s601_s30 = sshll.u32 %s853_s16, 7 }
  0x16   : > { %s580_s29 = sshll.u32 %s951_s28, 3  ;;  %s191_s6 = scalar_lea.hbm %s1121_s0, %s601_s30 }
  0x17   : > { %s183_s7 = scalar_lea.vmem [#allocation2], %s580_s29  ;;  %p960_p0 = pnand %p624_p13, %p927_p4 }
  0x18   : > { %s192_s8 = sshll.u32 %s183_s7, 4  ;;  %p584_p1 = scmp.ge.s32.totalorder %s857_s17, 1  ;;  %s193_s8 = int_to_ptr.vmem [resolvable:$true] %s192_s8 }
  0x19   : > { %s180_s10 = scalar_lea.sflag [#allocation3], %s951_s28  ;;  %p689_p2 = pneg %p960_p0 }
  0x1a   : > { %s700_s11 = scalar_lea.vmem %s193_s8, 128  ;;  %s859_s18 = smov [#allocation2]  }
  0x1b   : > { %p701_p3 = scmp.ne.s32.totalorder %s193_s8, %s700_s11  ;;  %s705_s19 = sshll.u32 %s859_s18, 4  ;;  %s706_s19 = int_to_ptr.vmem [resolvable:$false] %s705_s19 }
  0x1c   : > { %s707_s21 = scalar_lea.vmem %s706_s19, 256  ;;  %p708_p4 = scmp.lt.s32.totalorder %s193_s8, %s706_s19 }
  0x1d   : > { %p703_p5 = pnand %p701_p3, %p689_p2  ;;  %p709_p7 = scmp.lt.s32.totalorder %s707_s21, %s700_s11 }
  0x1f   : > { %p704_p6 = pneg %p703_p5  ;;  %p710_p10 = por %p709_p7, %p708_p4 }
  0x21   : > { %p711_p13 = pnand %p710_p10, %p704_p6 }
  0x23   : > { %714 = shalt.err (!%p711_p13)
}
  0x24   : > { %s860_s22 = smov 32   ;;  %s861_s23 = smov 2  }
  0x25   : > { %613 = dma.hbm_to_vmem [thread:$0]  (!%p960_p0), %s191_s6, 128, %s193_s8, %s180_s10, %s860_s22, %s860_s22, %s861_s23  }
  0x26   : > { %p219_p3 = scmp.lt.s32.totalorder %s857_s17, 3  ;;  %s583_s29 = sshll.u32 %s853_s16, 4 }
  0x27   : > { %s212_s7 = scalar_lea.hbm %s1122_s1, %s583_s29  ;;  %s205_s11 = scalar_lea.vmem [#allocation5], %s951_s28 }
  0x28   : > { %p977_p5 = pnand %p584_p1, %p219_p3  ;;  %s214_s18 = sshll.u32 %s205_s11, 4  ;;  %s215_s18 = int_to_ptr.vmem [resolvable:$true] %s214_s18 }
  0x29   : > { %s203_s19 = scalar_lea.sflag [#allocation6], %s951_s28  ;;  %s728_s21 = scalar_lea.vmem %s215_s18, 16 }
  0x2a   : > { %p729_p6 = scmp.ne.s32.totalorder %s215_s18, %s728_s21  ;;  %s862_s6 = smov [#allocation5]  }
  0x2b   : > { %s733_s8 = sshll.u32 %s862_s6, 4  ;;  %s734_s8 = int_to_ptr.vmem [resolvable:$false] %s733_s8 }
  0x2c   : > { %p731_p4 = pnand %p729_p6, %p689_p2  ;;  %s735_s10 = scalar_lea.vmem %s734_s8, 32 }
  0x2d   : > { %p736_p1 = scmp.lt.s32.totalorder %s215_s18, %s734_s8  ;;  %p737_p10 = scmp.lt.s32.totalorder %s735_s10, %s728_s21 }
  0x2e   : > { %p732_p7 = pneg %p731_p4 }
  0x2f   : > { %p738_p13 = por %p737_p10, %p736_p1 }
  0x31   : > { %p739_p3 = pnand %p738_p13, %p732_p7 }
  0x33   : > { %742 = shalt.err (!%p739_p3)
}
  0x34   : > { %616 = dma.hbm_to_vmem [thread:$0]  (!%p960_p0), %s212_s7, 16, %s215_s18, %s203_s19  }
  0x35   : > { %223 = sbr.rel (%p977_p5) target bundleno = 167 (0xa7), region = 28  ;;  %s994_s28 = sand.u32 (!%p977_p5), 1, %s841_s13  }
  0x36   : > { %s585_s22 = sshll.u32 (!%p977_p5), %s994_s28, 3  ;;  %s226_s23 = scalar_lea.sflag (!%p977_p5), [#allocation3], %s994_s28 }
  0x37   : > { %s229_s29 = scalar_lea.vmem (!%p977_p5), [#allocation2], %s585_s22 }
  0x3a   : > { %820 = dma.done.wait (%p933_p8), %s226_s23, 128  }
  0x3b   : > { %822 = vsyncadd (%p933_p8), %s226_s23, 4294967168  ;;  %s235_s9 = scalar_lea.sflag [#allocation6], %s994_s28  ;;  %s237_s30 = scalar_lea.vmem [#allocation5], %s994_s28 }
  0x3c   : > { %824 = dma.done.wait (%p933_p8), %s235_s9, 16  }
  0x3d   : > { %826 = vsyncadd (%p933_p8), %s235_s9, 4294967280  ;;  %s586_s4 = sshll.u32 %s994_s28, 2  ;;  %v863_v0 = vmov 0.0   ;;  %v281_v1 = vld [vmem:[%s229_s29] sm:$0x3]  ;;  %vm312_vm4 = vcmask 1041408  }
  0x3e   : > { %s1009_s5 = scalar_lea.vmem [#allocation7], %s586_s4  ;;  %s1012_s7 = scalar_lea.vmem [#allocation8], %s586_s4  ;;  %v588_v2 = vld [vmem:[%s229_s29 + $0x2] sm:$0x3]  ;;  %v589_v3 = vld [vmem:[%s229_s29 + $0x4] sm:$0x3] }
  0x3f   : > { %277 = vst [vmem:[%s1009_s5] sm:$0xf] %v863_v0  ;;  %278 = vst [vmem:[%s1012_s7] sm:$0xf] %v863_v0  ;;  %v288_v4 = vmax.f32 %v281_v1, %v588_v2  ;;  %v590_v5 = vld [vmem:[%s229_s29 + $0x6] sm:$0x3]  ;;  %v279_v23 = vld [vmem:[%s237_s30] sm:$0x1] }
  0x40   : > { %v280_v24 = vunpack.c.0.s8 %v279_v23  ;;  %vm389_vm5 = vcmask 1040384   ;;  %vm392_vm6 = vcmask 1042432   ;;  %s597_s24 = sshll.u32 %s849_s15, 6  ;;  %s422_s11 = sshll.u32 %s1009_s5, 4  ;;  %s1044_s11 = int_to_ptr.vmem [resolvable:$true] %s422_s11 }
  0x41   : > { %v289_v6 = vmax.f32 %v288_v4, %v589_v3  ;;  %s436_s18 = sshll.u32 %s1012_s7, 4  ;;  %s1042_s6 = scalar_lea.hbm %s1123_s2, %s597_s24  ;;  %s1053_s18 = int_to_ptr.vmem [resolvable:$true] %s436_s18 }
  0x42   : > { %vm308_vm0 = vcmp.eq.s32.totalorder %v280_v24, 0  ;;  %vm329_vm1 = vcmp.eq.s32.totalorder %v280_v24, 1  ;;  %vm349_vm2 = vcmp.eq.s32.totalorder %v280_v24, 2  ;;  %vm369_vm3 = vcmp.eq.s32.totalorder %v280_v24, 3  ;;  %s1051_s10 = scalar_lea.hbm %s1124_s3, %s597_s24  ;;  %s403_s22 = scalar_lea.sflag [#allocation4], %s994_s28 }
  0x43   : > { %v290_v7 = vmax.f32 %v289_v6, %v590_v5  ;;  %v591_v26 = vsel %vm308_vm0, 1.0, %v863_v0  ;;  %v592_v27 = vsel %vm329_vm1, 1.0, %v863_v0  ;;  %v593_v31 = vsel %vm349_vm2, 1.0, %v863_v0  ;;  %s743_s23 = scalar_lea.vmem %s1044_s11, 64  ;;  %s864_s29 = smov [#allocation7]  }
  0x44   : > { %v594_v33 = vsel %vm369_vm3, 1.0, %v863_v0  ;;  %p744_p8 = scmp.ne.s32.totalorder %s1044_s11, %s743_s23  ;;  %s747_s9 = sshll.u32 %s864_s29, 4  ;;  %s748_s9 = int_to_ptr.vmem [resolvable:$false] %s747_s9 }
  0x45   : > { %v291_v8 = vsub.f32 %v281_v1, %v290_v7  ;;  %v294_v9 = vsub.f32 %v588_v2, %v290_v7  ;;  %v297_v10 = vsub.f32 %v589_v3, %v290_v7  ;;  %v300_v11 = vsub.f32 %v590_v5, %v290_v7  ;;  %s749_s30 = scalar_lea.vmem %s748_s9, 128  ;;  %p750_p5 = scmp.lt.s32.totalorder %s1044_s11, %s748_s9 }
  0x46   : > { %p745_p0 = pnand %p744_p8, %p937_p9  ;;  %p751_p6 = scmp.lt.s32.totalorder %s749_s30, %s743_s23 }
  0x47   : > { %v292_v12 = vmul.f32 1.442695, %v291_v8  ;;  %v295_v13 = vmul.f32 1.442695, %v294_v9  ;;  %v298_v14 = vmul.f32 1.442695, %v297_v10 }
  0x48   : > { %v301_v15 = vmul.f32 1.442695, %v300_v11  ;;  %p746_p2 = pneg %p745_p0  ;;  %p752_p4 = por %p751_p6, %p750_p5 }
  0x49   : > { %677 = vpow2.f32 %v292_v12 }
  0x4a   : > { %679 = vpow2.f32 %v295_v13  ;;  %p753_p7 = pnand %p752_p4, %p746_p2 }
  0x4b   : > { %681 = vpow2.f32 %v298_v14 }
  0x4c   : > { %683 = vpow2.f32 %v301_v15 }
  0x56   : > { %v678_v16 = vpop.eup %677 }
  0x57   : > { %v680_v17 = vpop.eup %679 }
  0x58   : > { %v682_v18 = vpop.eup %681  ;;  %v303_v19 = vadd.f32 %v680_v17, %v678_v16 }
  0x59   : > { %v684_v20 = vpop.eup %683 }
  0x5a   : > { %v304_v21 = vadd.f32 %v682_v18, %v303_v19 }
  0x5c   : > { %v305_v22 = vadd.f32 %v684_v20, %v304_v21 }
  0x5e   : > { %685 = vrcp.f32 %v305_v22 }
  0x6b   : > { %v686_v25 = vpop.eup %685 }
  0x6c   : > { %v307_v28 = vmul.f32 %v686_v25, %v678_v16  ;;  %v328_v29 = vmul.f32 %v686_v25, %v680_v17  ;;  %v348_v30 = vmul.f32 %v686_v25, %v682_v18  ;;  %v368_v32 = vmul.f32 %v686_v25, %v684_v20 }
  0x6e   : > { %v311_v34 = vsel %vm308_vm0, %v307_v28, 0.0  ;;  %v320_v35 = vadd.f32 %v591_v26, %v307_v28  ;;  %v332_v36 = vsel %vm329_vm1, %v328_v29, 0.0  ;;  %v340_v37 = vadd.f32 %v592_v27, %v328_v29 }
  0x6f   : > { %v313_v38 = vsel %vm312_vm4, %v311_v34, 0.0  ;;  %v333_v39 = vsel %vm312_vm4, %v332_v36, 0.0  ;;  %v352_v40 = vsel %vm349_vm2, %v348_v30, 0.0  ;;  %v360_v41 = vadd.f32 %v593_v31, %v348_v30 }
  0x70   : > { %v314_v42 = vrot.slane %v313_v38, 4  ;;  %v321_v43 = vsel %vm312_vm4, %v320_v35, 0.0  ;;  %v334_v44 = vrot.slane %v333_v39, 4  ;;  %v341_v45 = vsel %vm312_vm4, %v340_v37, 0.0 }
  0x71   : > { %v322_v46 = vrot.slane %v321_v43, 4  ;;  %v342_v47 = vrot.slane %v341_v45, 4  ;;  %v380_v48 = vadd.f32 %v594_v33, %v368_v32  ;;  %v353_v49 = vsel %vm312_vm4, %v352_v40, 0.0  ;;  %v396_v40 = vld [vmem:[%s1012_s7] sm:$0xf] }
  0x72   : > { %v315_v50 = vadd.f32 %v314_v42, %v313_v38  ;;  %v335_v51 = vadd.f32 %v334_v44, %v333_v39  ;;  %v354_v52 = vrot.slane %v353_v49, 4  ;;  %v372_v53 = vsel %vm369_vm3, %v368_v32, 0.0  ;;  %v388_v32 = vld [vmem:[%s1009_s5] sm:$0xf] }
  0x73   : > { %v373_v54 = vsel %vm312_vm4, %v372_v53, 0.0  ;;  %v323_v55 = vadd.f32 %v322_v46, %v321_v43  ;;  %v343_v56 = vadd.f32 %v342_v47, %v341_v45  ;;  %v361_v57 = vsel %vm312_vm4, %v360_v41, 0.0 }
  0x74   : > { %v316_v58 = vrot.slane %v315_v50, 2  ;;  %v336_v59 = vrot.slane %v335_v51, 2  ;;  %v355_v60 = vadd.f32 %v354_v52, %v353_v49  ;;  %v374_v61 = vrot.slane %v373_v54, 4 }
  0x75   : > { %v324_v62 = vrot.slane %v323_v55, 2  ;;  %v344_v63 = vrot.slane %v343_v56, 2  ;;  %v362_v0 = vrot.slane %v361_v57, 4  ;;  %v381_v1 = vsel %vm312_vm4, %v380_v48, 0.0 }
  0x76   : > { %v317_v2 = vadd.f32 %v316_v58, %v315_v50  ;;  %v337_v3 = vadd.f32 %v336_v59, %v335_v51  ;;  %v356_v4 = vrot.slane %v355_v60, 2  ;;  %v375_v5 = vadd.f32 %v374_v61, %v373_v54 }
  0x77   : > { %v325_v6 = vadd.f32 %v324_v62, %v323_v55  ;;  %v345_v7 = vadd.f32 %v344_v63, %v343_v56  ;;  %v363_v8 = vadd.f32 %v362_v0, %v361_v57  ;;  %v382_v9 = vrot.slane %v381_v1, 4 }
  0x78   : > { %v318_v10 = vrot.slane %v317_v2, 1  ;;  %v338_v11 = vrot.slane %v337_v3, 1  ;;  %v357_v12 = vadd.f32 %v356_v4, %v355_v60  ;;  %v376_v13 = vrot.slane %v375_v5, 2 }
  0x79   : > { %v326_v14 = vrot.slane %v325_v6, 1  ;;  %v346_v15 = vrot.slane %v345_v7, 1  ;;  %v364_v16 = vrot.slane %v363_v8, 2  ;;  %v383_v17 = vadd.f32 %v382_v9, %v381_v1 }
  0x7a   : > { %v319_v18 = vadd.f32 %v318_v10, %v317_v2  ;;  %v339_v19 = vadd.f32 %v338_v11, %v337_v3  ;;  %v358_v20 = vrot.slane %v357_v12, 1  ;;  %v377_v21 = vadd.f32 %v376_v13, %v375_v5 }
  0x7b   : > { %v327_v22 = vadd.f32 %v326_v14, %v325_v6  ;;  %v347_v23 = vadd.f32 %v346_v15, %v345_v7  ;;  %v365_v24 = vadd.f32 %v364_v16, %v363_v8  ;;  %v384_v25 = vrot.slane %v383_v17, 2 }
  0x7c   : > { %v359_v26 = vadd.f32 %v358_v20, %v357_v12  ;;  %v378_v27 = vrot.slane %v377_v21, 1  ;;  %v390_v28 = vsel %vm389_vm5, %v319_v18, %v339_v19 }
  0x7d   : > { %v366_v29 = vrot.slane %v365_v24, 1  ;;  %v385_v30 = vadd.f32 %v384_v25, %v383_v17  ;;  %v397_v34 = vsel %vm389_vm5, %v327_v22, %v347_v23 }
  0x7e   : > { %v379_v31 = vadd.f32 %v378_v27, %v377_v21  ;;  %v391_v33 = vsel %vm312_vm4, %v390_v28, %v359_v26 }
  0x7f   : > { %v367_v35 = vadd.f32 %v366_v29, %v365_v24  ;;  %v386_v36 = vrot.slane %v385_v30, 1 }
  0x80   : > { %v393_v37 = vsel %vm392_vm6, %v391_v33, %v379_v31 }
  0x81   : > { %v394_v38 = vadd.f32 %v393_v37, %v388_v32  ;;  %v387_v39 = vadd.f32 %v386_v36, %v385_v30  ;;  %v398_v41 = vsel %vm312_vm4, %v397_v34, %v367_v35 }
  0x83   : > { %395 = vst [vmem:[%s1009_s5] sm:$0xf] %v394_v38  ;;  %v399_v42 = vsel %vm392_vm6, %v398_v41, %v387_v39 }
  0x84   : > { %v400_v43 = vadd.f32 %v399_v42, %v396_v40 }
  0x85   : > { %756 = shalt.err (!%p753_p7)
}
  0x86   : > { %s757_s4 = scalar_lea.hbm %s1042_s6, 64  ;;  %s761_s19 = scalar_lea.hbm %s1123_s2, 128 }
  0x87   : > { %p758_p1 = scmp.ne.s32.totalorder %s1042_s6, %s757_s4  ;;  %p762_p3 = scmp.lt.s32.totalorder %s1042_s6, %s1123_s2 }
  0x88   : > { %p763_p8 = scmp.lt.s32.totalorder %s761_s19, %s757_s4 }
  0x89   : > { %p759_p10 = pnand %p758_p1, %p937_p9 }
  0x8a   : > { %p764_p0 = por %p763_p8, %p762_p3 }
  0x8b   : > { %p760_p13 = pneg %p759_p10 }
  0x8d   : > { %p765_p2 = pnand %p764_p0, %p760_p13 }
  0x8f   : > { %768 = shalt.err (!%p765_p2)
}
  0x90   : > { %606 = dma.vmem_to_hbm [thread:$0]  (%p937_p9), %s1044_s11, 64, %s1042_s6, %s403_s22   ;;  %401 = vst [vmem:[%s1012_s7] sm:$0xf] %v400_v43 }
  0x91   : > { %s408_s8 = scalar_lea.sflag [#allocation9], %s994_s28  ;;  %s769_s23 = scalar_lea.vmem %s1053_s18, 64 }
  0x92   : > { %p770_p5 = scmp.ne.s32.totalorder %s1053_s18, %s769_s23  ;;  %s865_s29 = smov [#allocation8]  }
  0x93   : > { %s773_s9 = sshll.u32 %s865_s29, 4  ;;  %s774_s9 = int_to_ptr.vmem [resolvable:$false] %s773_s9 }
  0x94   : > { %p771_p6 = pnand %p770_p5, %p937_p9  ;;  %s775_s30 = scalar_lea.vmem %s774_s9, 128 }
  0x95   : > { %p776_p7 = scmp.lt.s32.totalorder %s1053_s18, %s774_s9  ;;  %p777_p1 = scmp.lt.s32.totalorder %s775_s30, %s769_s23 }
  0x96   : > { %p772_p4 = pneg %p771_p6 }
  0x97   : > { %p778_p10 = por %p777_p1, %p776_p7 }
  0x99   : > { %p779_p13 = pnand %p778_p10, %p772_p4 }
  0x9b   : > { %782 = shalt.err (!%p779_p13)
}
  0x9c   : > { %s783_s7 = scalar_lea.hbm %s1051_s10, 64  ;;  %s787_s6 = scalar_lea.hbm %s1124_s3, 128 }
  0x9d   : > { %p784_p3 = scmp.ne.s32.totalorder %s1051_s10, %s783_s7  ;;  %p788_p2 = scmp.lt.s32.totalorder %s1051_s10, %s1124_s3 }
  0x9e   : > { %p789_p5 = scmp.lt.s32.totalorder %s787_s6, %s783_s7 }
  0x9f   : > { %p785_p8 = pnand %p784_p3, %p937_p9 }
  0xa0   : > { %p790_p6 = por %p789_p5, %p788_p2 }
  0xa1   : > { %p786_p0 = pneg %p785_p8 }
  0xa3   : > { %p791_p4 = pnand %p790_p6, %p786_p0 }
  0xa5   : > { %794 = shalt.err (!%p791_p4)
}
  0xa6   : > { %607 = dma.vmem_to_hbm [thread:$0]  (%p937_p9), %s1053_s18, 64, %s1051_s10, %s408_s8  }
  0xa7 PF: > { %s448_s5 = sand.u32 1, %s837_s12   ;;  %p618_p7 = pnand %p579_p12, %p944_p11 }
  0xa8   : > { %s449_s24 = scalar_lea.sflag [#allocation4], %s448_s5 }
  0xa9   : > { %p619_p1 = pneg %p618_p7 }
  0xab   : > { %828 = dma.done.wait (%p619_p1), %s449_s24, 64  }
  0xac   : > { %830 = vsyncadd (%p619_p1), %s449_s24, 4294967232  ;;  %s458_s19 = scalar_lea.sflag [#allocation9], %s448_s5 }
  0xad   : > { %832 = dma.done.wait (%p619_p1), %s458_s19, 64  }
  0xae   : > { %834 = vsyncadd (%p619_p1), %s458_s19, 4294967232  ;;  %s26_s17 = sadd.s32 1, %s857_s17   ;;  %s1131_s12 = smov %s841_s13 }
  0xaf   : > { %p23_p10 = scmp.ge.s32.totalorder %s26_s17, 4   ;;  %s1132_s13 = smov %s845_s14 }
  0xb0   : > { %s1133_s14 = smov %s942_s26  ;;  %s1134_s15 = smov %s853_s16 }
  0xb1   : > { %s1135_s16 = smov %s1137_s20  ;;  %25 = sbr.rel (!%p23_p10) target bundleno = 10 (0xa), region = 110 }
  0xb6   :  { %463 = vsyncpa [#allocation3], 1 }
  0xb7   :  { %465 = vsyncpa [#allocation3 + $0x1], 1 }
  0xb8   :  { %466 = vsyncpa [#allocation6], 1 }
  0xb9   :  { %468 = vsyncpa [#allocation6 + $0x1], 1 }
  0xba   :  { %469 = vsyncpa [#allocation4], 1 }
  0xbb   :  { %471 = vsyncpa [#allocation4 + $0x1], 1 }
  0xbc   :  { %472 = vsyncpa [#allocation9], 1 }
  0xbd   :  { %474 = vsyncpa [#allocation9 + $0x1], 1 }

</bundles_post_ra>
